<compile_context>
chip_gen: v5e
topology: v5e:2x2
jax: 0.10.0
libtpu: 0.0.40
codegen_flags: <defaults>
</compile_context>

<pallas_src>
import functools

import jax
import jax.numpy as jnp
from jax import lax
from jax.experimental import pallas as pl
from jax.experimental.pallas import tpu as pltpu

HID1 = 250
HID2 = 100

LANE = 128
MAX_TILE_B = 2048              # upper bound on rows per grid step
SMALL_BATCH = 256              # below this: single block, minimal row padding
VMEM_TILE_BUDGET = 20 << 20    # headroom inside the 32 MiB scoped-VMEM default


def _round_up(n, m):
    return ((n + m - 1) // m) * m


def _pick_tiling(batch, in_dim):
    """Compile-time choice of (tile_b, n_tiles, sub_b)."""
    if batch <= SMALL_BATCH:
        # Minimal padding: 16-row multiple (bf16 output sublane packing).
        tile = _round_up(max(batch, 16), 16)
        n_tiles = 1
    else:
        # Cap the tile so two double-buffered f32 x-tiles fit the VMEM budget,
        # and always emit >= 2 grid steps so v7x's second TC shards the batch.
        cap = (VMEM_TILE_BUDGET // (in_dim * 4 * 2)) // 256 * 256
        cap = max(256, min(MAX_TILE_B, cap))
        n_tiles = max(2, -(-batch // cap))
        tile = _round_up(-(-batch // n_tiles), 256)
    if tile <= 512:
        sub = tile
    elif tile % 512 == 0:
        sub = 512
    else:
        sub = 256
    return tile, n_tiles, sub


def mlp_kernel(x_ref, w1_ref, b1_ref, w2_ref, b2_ref, w3_ref, b3_ref,
               y_ref, h2_ref, *, sub_b, n_sub):
    # Resident (constant index_map) weights / biases, loaded once per step.
    w1 = w1_ref[...]
    w2 = w2_ref[...]
    w3 = w3_ref[...]
    b1 = b1_ref[...]
    b2 = b2_ref[...]
    b3 = b3_ref[...]

    def body(s):
        r = pl.multiple_of(s * sub_b, sub_b)
        # f32 rows from the pipelined tile, cast to bf16 just before the MXU.
        xs = x_ref[pl.ds(r, sub_b), :].astype(jnp.bfloat16)

        # Layer 1: h1 = relu(x @ W1 + b1)   (bf16 matmul, f32 acc/bias/relu)
        h1 = jnp.dot(xs, w1, preferred_element_type=jnp.float32)
        h1 = jnp.maximum(h1 + b1, 0.0)

        # Layer 2: h2 = relu(h1 @ W2 + b2)
        h2 = jnp.dot(h1.astype(jnp.bfloat16), w2,
                     preferred_element_type=jnp.float32)
        h2 = jnp.maximum(h2 + b2, 0.0)
        h2_ref[pl.ds(r, sub_b), :] = h2.astype(h2_ref.dtype)

        # Layer 3: y = h2 @ W3 + b3   (no activation)
        y = jnp.dot(h2.astype(jnp.bfloat16), w3,
                    preferred_element_type=jnp.float32)
        y_ref[pl.ds(r, sub_b), :] = (y + b3).astype(y_ref.dtype)

    if n_sub == 1:
        body(0)
    else:
        # fori_loop (not a Python for) bounds the live range of the f32
        # intermediates per sub-tile -> no vreg/VMEM spills at large tiles.
        def loop_body(s, carry):
            body(s)
            return carry
        lax.fori_loop(0, n_sub, loop_body, 0)


def mlp_forward(x, padded_params, output_dim):
    """x: [B, C, H, W]. Returns (y_pred [B, output_dim] f32, h_2 [B, 100] f32)."""
    w1, b1, w2, b2, w3, b3 = padded_params
    B = x.shape[0]
    x_flat = x.reshape(B, -1).astype(jnp.float32)   # torch: x.view(batch, -1)
    in_dim = x_flat.shape[1]
    assert w1.shape[0] == in_dim

    h1_pad = w1.shape[1]
    h2_pad = w2.shape[1]
    out_pad = w3.shape[1]

    tile_b, n_tiles, sub_b = _pick_tiling(B, in_dim)
    b_pad = tile_b * n_tiles
    n_sub = tile_b // sub_b

    # Pad the batch dim only (zero rows, sliced away afterwards).  No feature
    # padding and no bf16 pre-pass: the kernel reads f32 x directly.
    if b_pad != B:
        x_in = jnp.zeros((b_pad, in_dim), jnp.float32).at[:B].set(x_flat)
    else:
        x_in = x_flat

    flops = 2 * b_pad * (in_dim * h1_pad + h1_pad * h2_pad + h2_pad * out_pad)
    bytes_accessed = (
        b_pad * in_dim * 4                                     # x (f32)
        + sum(int(p.size) * p.dtype.itemsize for p in padded_params)
        + b_pad * out_pad * 2 + b_pad * h2_pad * 2)            # y, h2 (bf16)

    kernel = functools.partial(mlp_kernel, sub_b=sub_b, n_sub=n_sub)

    # Weights/biases use constant index_maps so they stay VMEM-resident across
    # grid steps (no re-DMA).  (pl.Buffered(1) on those specs would trim the
    # ~0.6 MiB of pointless double-buffering on v7x; omitted to stay on the
    # default, well-tested pipeline path.)
    y_pad, h2_out = pl.pallas_call(
        kernel,
        out_shape=(
            jax.ShapeDtypeStruct((b_pad, out_pad), jnp.bfloat16),
            jax.ShapeDtypeStruct((b_pad, h2_pad), jnp.bfloat16),
        ),
        grid_spec=pltpu.PrefetchScalarGridSpec(
            num_scalar_prefetch=0,
            grid=(n_tiles,),
            in_specs=[
                pl.BlockSpec((tile_b, in_dim),  lambda i: (i, 0)),  # x tile (f32)
                pl.BlockSpec((in_dim, h1_pad),  lambda i: (0, 0)),  # W1 (resident)
                pl.BlockSpec((1, h1_pad),       lambda i: (0, 0)),  # b1
                pl.BlockSpec((h1_pad, h2_pad),  lambda i: (0, 0)),  # W2 (resident)
                pl.BlockSpec((1, h2_pad),       lambda i: (0, 0)),  # b2
                pl.BlockSpec((h2_pad, out_pad), lambda i: (0, 0)),  # W3 (resident)
                pl.BlockSpec((1, out_pad),      lambda i: (0, 0)),  # b3
            ],
            out_specs=[
                pl.BlockSpec((tile_b, out_pad), lambda i: (i, 0)),  # y tile
                pl.BlockSpec((tile_b, h2_pad),  lambda i: (i, 0)),  # h2 tile
            ],
        ),
        compiler_params=pltpu.CompilerParams(
            dimension_semantics=("parallel",)),
        cost_estimate=pl.CostEstimate(
            flops=flops, transcendentals=0, bytes_accessed=bytes_accessed),
    )(x_in, w1, b1, w2, b2, w3, b3)

    # Slice the padding away; upcast to f32 to match the torch interface dtype.
    y = y_pad[:B, :output_dim].astype(jnp.float32)
    h2 = h2_out[:B, :HID2].astype(jnp.float32)
    return y, h2


def init_params(key, input_dim, output_dim):
    """PyTorch-Linear-like uniform(-1/sqrt(fan_in), +) init.
    Weights stored transposed: [in_features, out_features] (y = x @ W + b)."""
    ks = jax.random.split(key, 6)

    def lin(kw, kb, fan_in, fan_out):
        bound = 1.0 / jnp.sqrt(fan_in)
        w = jax.random.uniform(kw, (fan_in, fan_out), jnp.float32, -bound, bound)
        b = jax.random.uniform(kb, (1, fan_out), jnp.float32, -bound, bound)
        return w, b

    w1, b1 = lin(ks[0], ks[1], input_dim, HID1)
    w2, b2 = lin(ks[2], ks[3], HID1, HID2)
    w3, b3 = lin(ks[4], ks[5], HID2, output_dim)
    return (w1, b1, w2, b2, w3, b3)


def prepare_params(params):
    """Pad hidden/output feature dims to multiples of 128 (lane-dense MXU N);
    weights -> bf16, biases stay f32.  W1's input dim is NOT padded: the kernel
    consumes unpadded f32 x directly.  Zero padding + ReLU(0)=0 keeps the math
    identical to the unpadded model."""
    w1, b1, w2, b2, w3, b3 = params
    in_dim = w1.shape[0]
    h1_pad = _round_up(HID1, LANE)            # 250 -> 256
    h2_pad = _round_up(HID2, LANE)            # 100 -> 128
    out_pad = _round_up(w3.shape[1], LANE)    # e.g. 10 -> 128

    def pad_w(w, ip, op):
        i, o = w.shape
        return jnp.zeros((ip, op), jnp.bfloat16).at[:i, :o].set(
            w.astype(jnp.bfloat16))

    def pad_b(b, op):
        o = b.shape[1]
        return jnp.zeros((1, op), jnp.float32).at[:, :o].set(b)

    return (pad_w(w1, in_dim, h1_pad), pad_b(b1, h1_pad),
            pad_w(w2, h1_pad, h2_pad), pad_b(b2, h2_pad),
            pad_w(w3, h2_pad, out_pad), pad_b(b3, out_pad))


if __name__ == "__main__":
    key = jax.random.PRNGKey(0)
    kx, kp = jax.random.split(key)

    # Small NCHW input: batch=2, channels=4, spatial=16x16 -> input_dim=1024
    B, C, H, W = 2, 4, 16, 16
    input_dim = C * H * W
    output_dim = 10

    x = jax.random.normal(kx, (B, C, H, W), jnp.float32)
    params = init_params(kp, input_dim, output_dim)
    padded_params = prepare_params(params)

    y_pred, h_2 = mlp_forward(x, padded_params, output_dim)
    jax.block_until_ready((y_pred, h_2))

    # Reference in plain JAX with the same bf16 matmul inputs / f32 accumulation
    # (matches the PyTorch module's math up to bf16 weight/activation rounding).
    w1, b1, w2, b2, w3, b3 = params
    xf = x.reshape(B, -1)

    def bf16_dot(a, w):
        return jnp.dot(a.astype(jnp.bfloat16), w.astype(jnp.bfloat16),
                       preferred_element_type=jnp.float32)

    h1_ref = jnp.maximum(bf16_dot(xf, w1) + b1, 0.0)
    h2_ref = jnp.maximum(bf16_dot(h1_ref, w2) + b2, 0.0)
    y_ref = bf16_dot(h2_ref, w3) + b3

    assert y_pred.shape == (B, output_dim) and h_2.shape == (B, HID2)
    assert y_pred.dtype == jnp.float32 and h_2.dtype == jnp.float32
    assert jnp.allclose(y_pred, y_ref, atol=2e-2, rtol=2e-2)
    assert jnp.allclose(h_2, h2_ref, atol=2e-2, rtol=2e-2)

    print("KERNEL_OK")
</pallas_src>

<mosaic_0001>
module attributes {stable_mosaic.version = 11 : i64} {
  func.func @mlp_kernel(%arg0: i32, %arg1: memref<16x1024xf32, #tpu.memory_space<vmem>>, %arg2: memref<1024x256xbf16, #tpu.memory_space<vmem>>, %arg3: memref<1x256xf32, #tpu.memory_space<vmem>>, %arg4: memref<256x128xbf16, #tpu.memory_space<vmem>>, %arg5: memref<1x128xf32, #tpu.memory_space<vmem>>, %arg6: memref<128x128xbf16, #tpu.memory_space<vmem>>, %arg7: memref<1x128xf32, #tpu.memory_space<vmem>>, %arg8: memref<16x128xbf16, #tpu.memory_space<vmem>>, %arg9: memref<16x128xbf16, #tpu.memory_space<vmem>>) attributes {dimension_semantics = [#tpu.dimension_semantics<parallel>], iteration_bounds = array<i64: 1>, scalar_prefetch = 0 : i64, scratch_operands = 0 : i64, tpu.core_type = #tpu.core_type<tc>, window_params = [{transform_indices = @transform_0, window_bounds = array<i64: 16, 1024>}, {pipeline_mode = #tpu.pipeline_mode<synchronous>, transform_indices = @transform_1, window_bounds = array<i64: 1024, 256>}, {pipeline_mode = #tpu.pipeline_mode<synchronous>, transform_indices = @transform_2, window_bounds = array<i64: 1, 256>}, {pipeline_mode = #tpu.pipeline_mode<synchronous>, transform_indices = @transform_3, window_bounds = array<i64: 256, 128>}, {pipeline_mode = #tpu.pipeline_mode<synchronous>, transform_indices = @transform_4, window_bounds = array<i64: 1, 128>}, {pipeline_mode = #tpu.pipeline_mode<synchronous>, transform_indices = @transform_5, window_bounds = array<i64: 128, 128>}, {pipeline_mode = #tpu.pipeline_mode<synchronous>, transform_indices = @transform_6, window_bounds = array<i64: 1, 128>}, {transform_indices = @transform_7, window_bounds = array<i64: 16, 128>}, {transform_indices = @transform_8, window_bounds = array<i64: 16, 128>}]} {
    %c0 = arith.constant 0 : index
    %c0_0 = arith.constant 0 : index
    %0 = vector.load %arg2[%c0, %c0_0] : memref<1024x256xbf16, #tpu.memory_space<vmem>>, vector<1024x256xbf16>
    %c0_1 = arith.constant 0 : index
    %c0_2 = arith.constant 0 : index
    %1 = vector.load %arg4[%c0_1, %c0_2] : memref<256x128xbf16, #tpu.memory_space<vmem>>, vector<256x128xbf16>
    %c0_3 = arith.constant 0 : index
    %c0_4 = arith.constant 0 : index
    %2 = vector.load %arg6[%c0_3, %c0_4] : memref<128x128xbf16, #tpu.memory_space<vmem>>, vector<128x128xbf16>
    %c0_5 = arith.constant 0 : index
    %c0_6 = arith.constant 0 : index
    %3 = vector.load %arg3[%c0_5, %c0_6] : memref<1x256xf32, #tpu.memory_space<vmem>>, vector<1x256xf32>
    %c0_7 = arith.constant 0 : index
    %c0_8 = arith.constant 0 : index
    %4 = vector.load %arg5[%c0_7, %c0_8] : memref<1x128xf32, #tpu.memory_space<vmem>>, vector<1x128xf32>
    %c0_9 = arith.constant 0 : index
    %c0_10 = arith.constant 0 : index
    %5 = vector.load %arg7[%c0_9, %c0_10] : memref<1x128xf32, #tpu.memory_space<vmem>>, vector<1x128xf32>
    %c0_i32 = arith.constant 0 : i32
    %6 = tpu.assume_multiple %c0_i32, 16 : i32
    %7 = arith.index_cast %6 : i32 to index
    %c0_11 = arith.constant 0 : index
    %8 = vector.load %arg1[%7, %c0_11] : memref<16x1024xf32, #tpu.memory_space<vmem>>, vector<16x1024xf32>
    %9 = arith.truncf %8 : vector<16x1024xf32> to vector<16x1024xbf16>
    %cst = arith.constant dense<0.000000e+00> : vector<16x256xf32>
    %10 = tpu.matmul %9, %0, %cst {dimension_numbers = #tpu.dot_dimension_numbers<[1], [0], [0], [1], [0, 0, 1, 1], [], []>} : vector<16x1024xbf16>, vector<1024x256xbf16>, vector<16x256xf32> -> vector<16x256xf32>
    %11 = vector.broadcast %3 : vector<1x256xf32> to vector<16x256xf32>
    %12 = arith.addf %10, %11 : vector<16x256xf32>
    %cst_12 = arith.constant 0.000000e+00 : f32
    %13 = vector.broadcast %cst_12 : f32 to vector<16x256xf32>
    %14 = arith.maximumf %12, %13 : vector<16x256xf32>
    %15 = arith.truncf %14 : vector<16x256xf32> to vector<16x256xbf16>
    %cst_13 = arith.constant dense<0.000000e+00> : vector<16x128xf32>
    %16 = tpu.matmul %15, %1, %cst_13 {dimension_numbers = #tpu.dot_dimension_numbers<[1], [0], [0], [1], [0, 0, 1, 1], [], []>} : vector<16x256xbf16>, vector<256x128xbf16>, vector<16x128xf32> -> vector<16x128xf32>
    %17 = vector.broadcast %4 : vector<1x128xf32> to vector<16x128xf32>
    %18 = arith.addf %16, %17 : vector<16x128xf32>
    %cst_14 = arith.constant 0.000000e+00 : f32
    %19 = vector.broadcast %cst_14 : f32 to vector<16x128xf32>
    %20 = arith.maximumf %18, %19 : vector<16x128xf32>
    %21 = arith.truncf %20 : vector<16x128xf32> to vector<16x128xbf16>
    %22 = arith.index_cast %6 : i32 to index
    %c0_15 = arith.constant 0 : index
    %23 = vector.load %arg9[%22, %c0_15] : memref<16x128xbf16, #tpu.memory_space<vmem>>, vector<16x128xbf16>
    tpu.vector_store %arg9[%22, %c0_15], %21 {strides = array<i32>} : memref<16x128xbf16, #tpu.memory_space<vmem>>, vector<16x128xbf16>,
    %24 = arith.truncf %20 : vector<16x128xf32> to vector<16x128xbf16>
    %cst_16 = arith.constant dense<0.000000e+00> : vector<16x128xf32>
    %25 = tpu.matmul %24, %2, %cst_16 {dimension_numbers = #tpu.dot_dimension_numbers<[1], [0], [0], [1], [0, 0, 1, 1], [], []>} : vector<16x128xbf16>, vector<128x128xbf16>, vector<16x128xf32> -> vector<16x128xf32>
    %26 = vector.broadcast %5 : vector<1x128xf32> to vector<16x128xf32>
    %27 = arith.addf %25, %26 : vector<16x128xf32>
    %28 = arith.truncf %27 : vector<16x128xf32> to vector<16x128xbf16>
    %29 = arith.index_cast %6 : i32 to index
    %c0_17 = arith.constant 0 : index
    %30 = vector.load %arg8[%29, %c0_17] : memref<16x128xbf16, #tpu.memory_space<vmem>>, vector<16x128xbf16>
    tpu.vector_store %arg8[%29, %c0_17], %28 {strides = array<i32>} : memref<16x128xbf16, #tpu.memory_space<vmem>>, vector<16x128xbf16>,
    return
  }
  func.func @transform_0(%arg0: i32) -> (i32, i32) {
    %c0_i32 = arith.constant 0 : i32
    %c0_i32_0 = arith.constant 0 : i32
    return %arg0, %c0_i32 : i32, i32
  }
  func.func @transform_1(%arg0: i32) -> (i32, i32) {
    %c0_i32 = arith.constant 0 : i32
    %c0_i32_0 = arith.constant 0 : i32
    %c0_i32_1 = arith.constant 0 : i32
    return %c0_i32, %c0_i32_0 : i32, i32
  }
  func.func @transform_2(%arg0: i32) -> (i32, i32) {
    %c0_i32 = arith.constant 0 : i32
    %c0_i32_0 = arith.constant 0 : i32
    %c0_i32_1 = arith.constant 0 : i32
    return %c0_i32, %c0_i32_0 : i32, i32
  }
  func.func @transform_3(%arg0: i32) -> (i32, i32) {
    %c0_i32 = arith.constant 0 : i32
    %c0_i32_0 = arith.constant 0 : i32
    %c0_i32_1 = arith.constant 0 : i32
    return %c0_i32, %c0_i32_0 : i32, i32
  }
  func.func @transform_4(%arg0: i32) -> (i32, i32) {
    %c0_i32 = arith.constant 0 : i32
    %c0_i32_0 = arith.constant 0 : i32
    %c0_i32_1 = arith.constant 0 : i32
    return %c0_i32, %c0_i32_0 : i32, i32
  }
  func.func @transform_5(%arg0: i32) -> (i32, i32) {
    %c0_i32 = arith.constant 0 : i32
    %c0_i32_0 = arith.constant 0 : i32
    %c0_i32_1 = arith.constant 0 : i32
    return %c0_i32, %c0_i32_0 : i32, i32
  }
  func.func @transform_6(%arg0: i32) -> (i32, i32) {
    %c0_i32 = arith.constant 0 : i32
    %c0_i32_0 = arith.constant 0 : i32
    %c0_i32_1 = arith.constant 0 : i32
    return %c0_i32, %c0_i32_0 : i32, i32
  }
  func.func @transform_7(%arg0: i32) -> (i32, i32) {
    %c0_i32 = arith.constant 0 : i32
    %c0_i32_0 = arith.constant 0 : i32
    return %arg0, %c0_i32 : i32, i32
  }
  func.func @transform_8(%arg0: i32) -> (i32, i32) {
    %c0_i32 = arith.constant 0 : i32
    %c0_i32_0 = arith.constant 0 : i32
    return %arg0, %c0_i32 : i32, i32
  }
}

</mosaic_0001>

<bundles_post_ra>
// kernel: tpu_custom_call.1
= control target key start
LH: loop header
LB: loop body
LE: loop exit
PB: predicated region body
PF: predicated region fallthrough
CT: control target
= control target key end

     0   :  { %14 = vsyncpa [#allocation3], 0  ;;  %s2529_s0 = inlined_call_operand.hbm [shape: f32[16,1024], index: 0, kind: input, shape index: {}]   ;;  %s2530_s1 = inlined_call_operand.hbm [shape: bf16[1024,256], index: 1, kind: input, shape index: {}]   ;;  %s2531_s2 = inlined_call_operand.hbm [shape: f32[1,256], index: 2, kind: input, shape index: {}]   ;;  %s2532_s3 = inlined_call_operand.hbm [shape: bf16[256,128], index: 3, kind: input, shape index: {}]   ;;  %s2533_s4 = inlined_call_operand.vmem [shape: f32[1,128], index: 4, kind: input, shape index: {}]   ;;  %s2534_s5 = inlined_call_operand.hbm [shape: bf16[128,128], index: 5, kind: input, shape index: {}]   ;;  %s2535_s6 = inlined_call_operand.vmem [shape: f32[1,128], index: 6, kind: input, shape index: {}]   ;;  %s2536_s7 = inlined_call_operand.hbm [shape: bf16[16,128], index: 7, kind: output, shape index: {0}]   ;;  %s2537_s8 = inlined_call_operand.hbm [shape: bf16[16,128], index: 8, kind: output, shape index: {1}]  }
   0x1   :  { %15 = vsyncpa [#allocation6], 0 }
   0x2   :  { %16 = vsyncpa [#allocation9], 0 }
   0x3   :  { %17 = vsyncpa [#allocation4], 0  ;;  %s36_s29 = sshll.u32 %s2530_s1, 4  ;;  %s37_s29 = int_to_ptr.hbm [resolvable:$true] %s36_s29 }
   0x4   :  { %18 = vsyncpa [#allocation13], 0  ;;  %s2396_s30 = smov [#allocation5]   ;;  %s2397_s10 = smov 128  }
   0x5   :  { %s38_s9 = sshll.u32 %s2396_s30, 4  ;;  %s2398_s11 = smov 8   ;;  %s39_s9 = int_to_ptr.vmem [resolvable:$true] %s38_s9 }
   0x6   :  { %44 = dma.hbm_to_vmem [thread:$0]  %s37_s29, 16384, %s39_s9, [#allocation6], %s2397_s10, %s2397_s10, %s2398_s11  }
   0x7   :  { %s60_s14 = sshll.u32 %s2532_s3, 4  ;;  %s2399_s15 = smov [#allocation8]   ;;  %s61_s14 = int_to_ptr.hbm [resolvable:$true] %s60_s14 }
   0x8   :  { %s62_s16 = sshll.u32 %s2399_s15, 4  ;;  %s2400_s17 = smov 64   ;;  %s63_s16 = int_to_ptr.vmem [resolvable:$true] %s62_s16 }
   0x9   :  { %s2401_s18 = smov 4   ;;  %s23_s20 = sshll.u32 %s2529_s0, 4  ;;  %s24_s20 = int_to_ptr.hbm [resolvable:$true] %s23_s20 }
   0xa   :  { %68 = dma.hbm_to_vmem [thread:$0]  %s61_s14, 2048, %s63_s16, [#allocation9], %s2400_s17, %s2400_s17, %s2401_s18  }
   0xb   :  { %s2402_s21 = smov [#allocation2]   ;;  %s2403_s23 = smov 1024  }
   0xc   :  { %s25_s22 = sshll.u32 %s2402_s21, 4  ;;  %s50_s25 = sshll.u32 %s2531_s2, 4  ;;  %s26_s22 = int_to_ptr.vmem [resolvable:$true] %s25_s22  ;;  %s51_s25 = int_to_ptr.hbm [resolvable:$true] %s50_s25 }
   0xd   :  { %31 = dma.hbm_to_vmem [thread:$0]  %s24_s20, 2048, %s26_s22, [#allocation3], %s2403_s23, %s2403_s23, %s2400_s17  }
   0xe   :  { %s2404_s26 = smov [#allocation7]   ;;  %s75_s30 = sshll.u32 %s2534_s5, 4  ;;  %s76_s30 = int_to_ptr.hbm [resolvable:$true] %s75_s30 }
   0xf   :  { %s52_s27 = sshll.u32 %s2404_s26, 4  ;;  %s2405_s0 = smov [#allocation10]   ;;  %s53_s27 = int_to_ptr.vmem [resolvable:$true] %s52_s27 }
  0x10   :  { %55 = dma.hbm_to_vmem [thread:$0]  %s51_s25, 32, %s53_s27, [#allocation6]  }
  0x11   :  { %s77_s9 = sshll.u32 %s2405_s0, 4  ;;  %s78_s9 = int_to_ptr.vmem [resolvable:$true] %s77_s9 }
  0x12   :  { %83 = dma.hbm_to_vmem [thread:$0]  %s76_s30, 1024, %s78_s9, [#allocation9], %s2400_s17, %s2400_s17, %s2401_s18  }
  0x13   :  { %2386 = dma.done.wait [#allocation3], 2048  }
  0x14   :  { %2387 = vsyncadd [#allocation3], 4294965248 }
  0x15   :  { %2388 = dma.done.wait [#allocation6], 16416  }
  0x16   :  { %2389 = vsyncadd [#allocation6], 4294950880 }
  0x17   :  { %2390 = dma.done.wait [#allocation9], 3072  }
  0x18   :  { %2391 = vsyncadd [#allocation9], 4294964224  ;;  %v1492_v0 = vld [vmem:[#allocation5 + $0x70] sm:$0xf]  ;;  %v2057_v1 = vld [vmem:[#allocation5 + $0x74] sm:$0xf0] }
  0x19   :  { %v1556_v2 = vld [vmem:[#allocation5 + $0xf0] sm:$0xf]  ;;  %v1493_v3 = vor.u32 %v2057_v1, %v1492_v0  ;;  %v2073_v4 = vld [vmem:[#allocation5 + $0xf4] sm:$0xf0]  ;;  %v1484_v11 = vld [vmem:[#allocation5 + $0x60] sm:$0xf] }
  0x1a   :  { %v1620_v5 = vld [vmem:[#allocation5 + $0x170] sm:$0xf]  ;;  %v2089_v6 = vld [vmem:[#allocation5 + $0x174] sm:$0xf0]  ;;  %v1557_v7 = vor.u32 %v2073_v4, %v1556_v2  ;;  %v2055_v13 = vld [vmem:[#allocation5 + $0x64] sm:$0xf0] }
  0x1b   :  { %v1621_v8 = vor.u32 %v2089_v6, %v1620_v5  ;;  %v1684_v9 = vld [vmem:[#allocation5 + $0x1f0] sm:$0xf]  ;;  %v2105_v10 = vld [vmem:[#allocation5 + $0x1f4] sm:$0xf0]  ;;  %957 = vmatpush.bf16.msra.mxu0 %v1493_v3  ;;  %v1548_v14 = vld [vmem:[#allocation5 + $0xe0] sm:$0xf]  ;;  %v1485_v16 = vor.u32 %v2055_v13, %v1484_v11 }
  0x1c   :  { %v1685_v12 = vor.u32 %v2105_v10, %v1684_v9  ;;  %v2071_v15 = vld [vmem:[#allocation5 + $0xe4] sm:$0xf0]  ;;  %971 = vmatpush.bf16.msra.mxu1 %v1557_v7  ;;  %v1612_v18 = vld [vmem:[#allocation5 + $0x160] sm:$0xf]  ;;  %v1476_v23 = vld [vmem:[#allocation5 + $0x50] sm:$0xf] }
  0x1d   :  { %985 = vmatpush.bf16.msra.mxu2 %v1621_v8  ;;  %v1549_v17 = vor.u32 %v2071_v15, %v1548_v14  ;;  %v2087_v19 = vld [vmem:[#allocation5 + $0x164] sm:$0xf0]  ;;  %v1676_v20 = vld [vmem:[#allocation5 + $0x1e0] sm:$0xf]  ;;  %v2053_v24 = vld [vmem:[#allocation5 + $0x54] sm:$0xf0] }
  0x1e   :  { %999 = vmatpush.bf16.msra.mxu3 %v1685_v12  ;;  %v1613_v21 = vor.u32 %v2087_v19, %v1612_v18  ;;  %v2103_v22 = vld [vmem:[#allocation5 + $0x1e4] sm:$0xf0]  ;;  %v1540_v26 = vld [vmem:[#allocation5 + $0xd0] sm:$0xf]  ;;  %v2069_v27 = vld [vmem:[#allocation5 + $0xd4] sm:$0xf0]  ;;  %v1477_v29 = vor.u32 %v2053_v24, %v1476_v23 }
  0x1f   :  { %v1677_v25 = vor.u32 %v2103_v22, %v1676_v20  ;;  %v1604_v28 = vld [vmem:[#allocation5 + $0x150] sm:$0xf]  ;;  %958 = vmatpush.bf16.msra.mxu0 %v1485_v16  ;;  %v2085_v30 = vld [vmem:[#allocation5 + $0x154] sm:$0xf0]  ;;  %v1541_v33 = vor.u32 %v2069_v27, %v1540_v26  ;;  %v1468_v35 = vld [vmem:[#allocation5 + $0x40] sm:$0xf] }
  0x20   :  { %v1668_v31 = vld [vmem:[#allocation5 + $0x1d0] sm:$0xf]  ;;  %v2101_v32 = vld [vmem:[#allocation5 + $0x1d4] sm:$0xf0]  ;;  %972 = vmatpush.bf16.msra.mxu1 %v1549_v17  ;;  %v1605_v34 = vor.u32 %v2085_v30, %v1604_v28  ;;  %v2051_v36 = vld [vmem:[#allocation5 + $0x44] sm:$0xf0] }
  0x21   :  { %986 = vmatpush.bf16.msra.mxu2 %v1613_v21  ;;  %v1532_v37 = vld [vmem:[#allocation5 + $0xc0] sm:$0xf]  ;;  %v1669_v38 = vor.u32 %v2101_v32, %v1668_v31  ;;  %v2067_v39 = vld [vmem:[#allocation5 + $0xc4] sm:$0xf0]  ;;  %v1469_v44 = vor.u32 %v2051_v36, %v1468_v35  ;;  %v1460_v47 = vld [vmem:[#allocation5 + $0x30] sm:$0xf] }
  0x22   :  { %1000 = vmatpush.bf16.msra.mxu3 %v1677_v25  ;;  %v1596_v40 = vld [vmem:[#allocation5 + $0x140] sm:$0xf]  ;;  %v2083_v41 = vld [vmem:[#allocation5 + $0x144] sm:$0xf0]  ;;  %v1533_v45 = vor.u32 %v2067_v39, %v1532_v37  ;;  %v2049_v48 = vld [vmem:[#allocation5 + $0x34] sm:$0xf0] }
  0x23   :  { %v1660_v42 = vld [vmem:[#allocation5 + $0x1c0] sm:$0xf]  ;;  %v2099_v43 = vld [vmem:[#allocation5 + $0x1c4] sm:$0xf0]  ;;  %959 = vmatpush.bf16.msra.mxu0 %v1477_v29  ;;  %v1597_v46 = vor.u32 %v2083_v41, %v1596_v40  ;;  %v1524_v49 = vld [vmem:[#allocation5 + $0xb0] sm:$0xf]  ;;  %v1461_v56 = vor.u32 %v2049_v48, %v1460_v47 }
  0x24   :  { %973 = vmatpush.bf16.msra.mxu1 %v1541_v33  ;;  %v1661_v50 = vor.u32 %v2099_v43, %v1660_v42  ;;  %v2065_v51 = vld [vmem:[#allocation5 + $0xb4] sm:$0xf0]  ;;  %v1588_v52 = vld [vmem:[#allocation5 + $0x130] sm:$0xf]  ;;  %v1452_v59 = vld [vmem:[#allocation5 + $0x20] sm:$0xf] }
  0x25   :  { %987 = vmatpush.bf16.msra.mxu2 %v1605_v34  ;;  %v2081_v53 = vld [vmem:[#allocation5 + $0x134] sm:$0xf0]  ;;  %v1652_v54 = vld [vmem:[#allocation5 + $0x1b0] sm:$0xf]  ;;  %v1525_v57 = vor.u32 %v2065_v51, %v1524_v49  ;;  %v2047_v60 = vld [vmem:[#allocation5 + $0x24] sm:$0xf0] }
  0x26   :  { %1001 = vmatpush.bf16.msra.mxu3 %v1669_v38  ;;  %v2097_v55 = vld [vmem:[#allocation5 + $0x1b4] sm:$0xf0]  ;;  %v1589_v58 = vor.u32 %v2081_v53, %v1588_v52  ;;  %v1516_v61 = vld [vmem:[#allocation5 + $0xa0] sm:$0xf]  ;;  %v2063_v63 = vld [vmem:[#allocation5 + $0xa4] sm:$0xf0]  ;;  %v1453_v4 = vor.u32 %v2047_v60, %v1452_v59 }
  0x27   :  { %960 = vmatpush.bf16.msra.mxu0 %v1469_v44  ;;  %v1653_v62 = vor.u32 %v2097_v55, %v1652_v54  ;;  %v1580_v0 = vld [vmem:[#allocation5 + $0x120] sm:$0xf]  ;;  %v2079_v1 = vld [vmem:[#allocation5 + $0x124] sm:$0xf0]  ;;  %v1517_v5 = vor.u32 %v2063_v63, %v1516_v61  ;;  %v1444_v7 = vld [vmem:[#allocation5 + $0x10] sm:$0xf] }
  0x28   :  { %974 = vmatpush.bf16.msra.mxu1 %v1533_v45  ;;  %v1644_v2 = vld [vmem:[#allocation5 + $0x1a0] sm:$0xf]  ;;  %v2095_v3 = vld [vmem:[#allocation5 + $0x1a4] sm:$0xf0]  ;;  %v1581_v6 = vor.u32 %v2079_v1, %v1580_v0  ;;  %v2045_v8 = vld [vmem:[#allocation5 + $0x14] sm:$0xf0] }
  0x29   :  { %988 = vmatpush.bf16.msra.mxu2 %v1597_v46  ;;  %v1508_v9 = vld [vmem:[#allocation5 + $0x90] sm:$0xf]  ;;  %v1645_v10 = vor.u32 %v2095_v3, %v1644_v2  ;;  %v2061_v11 = vld [vmem:[#allocation5 + $0x94] sm:$0xf0]  ;;  %v1445_v16 = vor.u32 %v2045_v8, %v1444_v7  ;;  %v1436_v17 = vld [vmem:[#allocation5] sm:$0xf] }
  0x2a   :  { %1002 = vmatpush.bf16.msra.mxu3 %v1661_v50  ;;  %v1572_v12 = vld [vmem:[#allocation5 + $0x110] sm:$0xf]  ;;  %v2077_v13 = vld [vmem:[#allocation5 + $0x114] sm:$0xf0]  ;;  %v2043_v18 = vld [vmem:[#allocation5 + $0x4] sm:$0xf0]  ;;  %v1509_v19 = vor.u32 %v2061_v11, %v1508_v9 }
  0x2b   :  { %961 = vmatpush.bf16.msra.mxu0 %v1461_v56  ;;  %v1636_v14 = vld [vmem:[#allocation5 + $0x190] sm:$0xf]  ;;  %v2093_v15 = vld [vmem:[#allocation5 + $0x194] sm:$0xf0]  ;;  %v1573_v20 = vor.u32 %v2077_v13, %v1572_v12  ;;  %v1500_v21 = vld [vmem:[#allocation5 + $0x80] sm:$0xf]  ;;  %v1437_v31 = vor.u32 %v2043_v18, %v1436_v17 }
  0x2c   :  { %975 = vmatpush.bf16.msra.mxu1 %v1525_v57  ;;  %v2059_v22 = vld [vmem:[#allocation5 + $0x84] sm:$0xf0]  ;;  %v1564_v23 = vld [vmem:[#allocation5 + $0x100] sm:$0xf]  ;;  %v1637_v24 = vor.u32 %v2093_v15, %v1636_v14  ;;  %v1748_v28 = vld [vmem:[#allocation5 + $0x270] sm:$0xf] }
  0x2d   :  { %989 = vmatpush.bf16.msra.mxu2 %v1589_v58  ;;  %v2075_v25 = vld [vmem:[#allocation5 + $0x104] sm:$0xf0]  ;;  %v1628_v26 = vld [vmem:[#allocation5 + $0x180] sm:$0xf]  ;;  %v2121_v29 = vld [vmem:[#allocation5 + $0x274] sm:$0xf0]  ;;  %v1501_v35 = vor.u32 %v2059_v22, %v1500_v21 }
  0x2e   :  { %1003 = vmatpush.bf16.msra.mxu3 %v1653_v62  ;;  %v2091_v27 = vld [vmem:[#allocation5 + $0x184] sm:$0xf0]  ;;  %v1812_v30 = vld [vmem:[#allocation5 + $0x2f0] sm:$0xf]  ;;  %v2137_v32 = vld [vmem:[#allocation5 + $0x2f4] sm:$0xf0]  ;;  %v1565_v36 = vor.u32 %v2075_v25, %v1564_v23  ;;  %v1749_v40 = vor.u32 %v2121_v29, %v1748_v28 }
  0x2f   :  { %962 = vmatpush.bf16.msra.mxu0 %v1453_v4  ;;  %v1876_v33 = vld [vmem:[#allocation5 + $0x370] sm:$0xf]  ;;  %v2153_v34 = vld [vmem:[#allocation5 + $0x374] sm:$0xf0]  ;;  %v1629_v39 = vor.u32 %v2091_v27, %v1628_v26  ;;  %v1740_v41 = vld [vmem:[#allocation5 + $0x260] sm:$0xf]  ;;  %v1813_v43 = vor.u32 %v2137_v32, %v1812_v30 }
  0x30   :  { %976 = vmatpush.bf16.msra.mxu1 %v1517_v5  ;;  %v1940_v37 = vld [vmem:[#allocation5 + $0x3f0] sm:$0xf]  ;;  %v2169_v38 = vld [vmem:[#allocation5 + $0x3f4] sm:$0xf0]  ;;  %v2119_v42 = vld [vmem:[#allocation5 + $0x264] sm:$0xf0]  ;;  %v1877_v44 = vor.u32 %v2153_v34, %v1876_v33 }
  0x31   :  { %990 = vmatpush.bf16.msra.mxu2 %v1581_v6  ;;  %v1804_v45 = vld [vmem:[#allocation5 + $0x2e0] sm:$0xf]  ;;  %v2135_v46 = vld [vmem:[#allocation5 + $0x2e4] sm:$0xf0]  ;;  %v1941_v48 = vor.u32 %v2169_v38, %v1940_v37  ;;  %v290_v54 = vld [vmem:[#allocation2 + $0x10] sm:$0xff]  ;;  %v1741_v55 = vor.u32 %v2119_v42, %v1740_v41  ;;  %s2406_s10 = smov [#allocation12]  }
  0x32   :  { %1004 = vmatpush.bf16.msra.mxu3 %v1645_v10  ;;  %v1868_v47 = vld [vmem:[#allocation5 + $0x360] sm:$0xf]  ;;  %v2151_v49 = vld [vmem:[#allocation5 + $0x364] sm:$0xf0]  ;;  %v1732_v56 = vld [vmem:[#allocation5 + $0x250] sm:$0xf]  ;;  %v1805_v60 = vor.u32 %v2135_v46, %v1804_v45 }
  0x33   :  { %963 = vmatpush.bf16.msra.mxu0 %v1445_v16  ;;  %v1932_v50 = vld [vmem:[#allocation5 + $0x3e0] sm:$0xf]  ;;  %v2167_v51 = vld [vmem:[#allocation5 + $0x3e4] sm:$0xf0]  ;;  %v2117_v57 = vld [vmem:[#allocation5 + $0x254] sm:$0xf0]  ;;  %v1869_v61 = vor.u32 %v2151_v49, %v1868_v47 }
  0x34   :  { %977 = vmatpush.bf16.msra.mxu1 %v1509_v19  ;;  %v288_v52 = vld [vmem:[#allocation2] sm:$0xff]  ;;  %v298_v59 = vld [vmem:[#allocation2 + $0x50] sm:$0xff]  ;;  %v2133_v63 = vld [vmem:[#allocation5 + $0x2d4] sm:$0xf0]  ;;  %v1933_v2 = vor.u32 %v2167_v51, %v1932_v50  ;;  %v1733_v9 = vor.u32 %v2117_v57, %v1732_v56  ;;  %s1412_s11 = sshll.u32 %s2406_s10, 4  ;;  %s1414_s13 = sshll.u32 %s2537_s8, 4  ;;  %s1413_s11 = int_to_ptr.vmem [resolvable:$true] %s1412_s11  ;;  %s1415_s13 = int_to_ptr.hbm [resolvable:$true] %s1414_s13 }
  0x35   :  { %991 = vmatpush.bf16.msra.mxu2 %v1573_v20  ;;  %v296_v53 = vld [vmem:[#allocation2 + $0x40] sm:$0xff]  ;;  %v1796_v62 = vld [vmem:[#allocation5 + $0x2d0] sm:$0xf]  ;;  %v2477_v1 = vpack.c.bf16 %v298_v59, %v290_v54  ;;  %v2149_v3 = vld [vmem:[#allocation5 + $0x354] sm:$0xf0]  ;;  %s2407_s16 = smov [#allocation11]  }
  0x36   :  { %1005 = vmatpush.bf16.msra.mxu3 %v1637_v24  ;;  %v2475_v58 = vpack.c.bf16 %v296_v53, %v288_v52  ;;  %v1860_v0 = vld [vmem:[#allocation5 + $0x350] sm:$0xf]  ;;  %v2165_v5 = vld [vmem:[#allocation5 + $0x3d4] sm:$0xf0]  ;;  %v289_v6 = vld [vmem:[#allocation2 + $0x8] sm:$0xff]  ;;  %v1797_v12 = vor.u32 %v2133_v63, %v1796_v62  ;;  %s1399_s1 = sshll.u32 %s2407_s16, 4  ;;  %s1400_s1 = int_to_ptr.vmem [resolvable:$true] %s1399_s1 }
  0x37   :  { %964 = vmatpush.bf16.msra.mxu0 %v1437_v31  ;;  %v1924_v4 = vld [vmem:[#allocation5 + $0x3d0] sm:$0xf]  ;;  %v297_v7 = vld [vmem:[#allocation2 + $0x48] sm:$0xff]  ;;  %v291_v8 = vld [vmem:[#allocation2 + $0x18] sm:$0xff]  ;;  %v1861_v13 = vor.u32 %v2149_v3, %v1860_v0  ;;  %s1401_s21 = sshll.u32 %s2536_s7, 4  ;;  %s1402_s21 = int_to_ptr.hbm [resolvable:$true] %s1401_s21 }
  0x38   :  { %978 = vmatpush.bf16.msra.mxu1 %v1501_v35  ;;  %v2481_v10 = vpack.c.bf16 %v297_v7, %v289_v6  ;;  %v299_v11 = vld [vmem:[#allocation2 + $0x58] sm:$0xff]  ;;  %v1724_v14 = vld [vmem:[#allocation5 + $0x240] sm:$0xf]  ;;  %v2115_v15 = vld [vmem:[#allocation5 + $0x244] sm:$0xf0]  ;;  %v1925_v18 = vor.u32 %v2165_v5, %v1924_v4 }
  0x39   :  { %992 = vmatpush.bf16.msra.mxu2 %v1565_v36  ;;  %v1788_v16 = vld [vmem:[#allocation5 + $0x2c0] sm:$0xf]  ;;  %v2483_v17 = vpack.c.bf16 %v299_v11, %v291_v8  ;;  %v2131_v19 = vld [vmem:[#allocation5 + $0x2c4] sm:$0xf0]  ;;  %v1725_v24 = vor.u32 %v2115_v15, %v1724_v14  ;;  %v1716_v27 = vld [vmem:[#allocation5 + $0x230] sm:$0xf] }
  0x3a   :  { %1006 = vmatpush.bf16.msra.mxu3 %v1629_v39  ;;  %965 = vmatmul.bf16.vlgmr.msra.gmra.mxu0 %v2475_v58  ;;  %v1852_v20 = vld [vmem:[#allocation5 + $0x340] sm:$0xf]  ;;  %v2147_v21 = vld [vmem:[#allocation5 + $0x344] sm:$0xf0]  ;;  %v1789_v25 = vor.u32 %v2131_v19, %v1788_v16  ;;  %v2113_v28 = vld [vmem:[#allocation5 + $0x234] sm:$0xf0] }
  0x3b   :  { %1013 = vmatpush.bf16.msrb.mxu0 %v1749_v40  ;;  %979 = vmatmul.bf16.vlgmr.msra.gmra.mxu1 %v2481_v10  ;;  %v1916_v22 = vld [vmem:[#allocation5 + $0x3c0] sm:$0xf]  ;;  %v2163_v23 = vld [vmem:[#allocation5 + $0x3c4] sm:$0xf0]  ;;  %v1853_v26 = vor.u32 %v2147_v21, %v1852_v20  ;;  %v1780_v29 = vld [vmem:[#allocation5 + $0x2b0] sm:$0xf]  ;;  %v1717_v36 = vor.u32 %v2113_v28, %v1716_v27 }
  0x3c   :  { %1027 = vmatpush.bf16.msrb.mxu1 %v1813_v43  ;;  %993 = vmatmul.bf16.vlgmr.msra.gmra.mxu2 %v2477_v1  ;;  %v1917_v30 = vor.u32 %v2163_v23, %v1916_v22  ;;  %v2129_v31 = vld [vmem:[#allocation5 + $0x2b4] sm:$0xf0]  ;;  %v1844_v32 = vld [vmem:[#allocation5 + $0x330] sm:$0xf]  ;;  %v1708_v39 = vld [vmem:[#allocation5 + $0x220] sm:$0xf] }
  0x3d   :  { %1041 = vmatpush.bf16.msrb.mxu2 %v1877_v44  ;;  %1007 = vmatmul.bf16.vlgmr.msra.gmra.mxu3 %v2483_v17  ;;  %v2145_v33 = vld [vmem:[#allocation5 + $0x334] sm:$0xf0]  ;;  %v1908_v34 = vld [vmem:[#allocation5 + $0x3b0] sm:$0xf]  ;;  %v1781_v37 = vor.u32 %v2129_v31, %v1780_v29  ;;  %v2111_v40 = vld [vmem:[#allocation5 + $0x224] sm:$0xf0] }
  0x3e   :  { %1055 = vmatpush.bf16.msrb.mxu3 %v1941_v48  ;;  %v2161_v35 = vld [vmem:[#allocation5 + $0x3b4] sm:$0xf0]  ;;  %v1845_v38 = vor.u32 %v2145_v33, %v1844_v32  ;;  %v1772_v41 = vld [vmem:[#allocation5 + $0x2a0] sm:$0xf]  ;;  %v2127_v43 = vld [vmem:[#allocation5 + $0x2a4] sm:$0xf0]  ;;  %v1709_v48 = vor.u32 %v2111_v40, %v1708_v39 }
  0x3f   :  { %1014 = vmatpush.bf16.msrb.mxu0 %v1741_v55  ;;  %v1909_v42 = vor.u32 %v2161_v35, %v1908_v34  ;;  %v1836_v44 = vld [vmem:[#allocation5 + $0x320] sm:$0xf]  ;;  %v2143_v45 = vld [vmem:[#allocation5 + $0x324] sm:$0xf0]  ;;  %v1700_v49 = vld [vmem:[#allocation5 + $0x210] sm:$0xf]  ;;  %v1773_v50 = vor.u32 %v2127_v43, %v1772_v41 }
  0x40   :  { %1028 = vmatpush.bf16.msrb.mxu1 %v1805_v60  ;;  %v1900_v46 = vld [vmem:[#allocation5 + $0x3a0] sm:$0xf]  ;;  %v2159_v47 = vld [vmem:[#allocation5 + $0x3a4] sm:$0xf0]  ;;  %v1837_v51 = vor.u32 %v2143_v45, %v1836_v44  ;;  %v2109_v52 = vld [vmem:[#allocation5 + $0x214] sm:$0xf0] }
  0x41   :  { %1042 = vmatpush.bf16.msrb.mxu2 %v1869_v61  ;;  %v1764_v53 = vld [vmem:[#allocation5 + $0x290] sm:$0xf]  ;;  %v2125_v54 = vld [vmem:[#allocation5 + $0x294] sm:$0xf0]  ;;  %v1901_v55 = vor.u32 %v2159_v47, %v1900_v46  ;;  %v1692_v61 = vld [vmem:[#allocation5 + $0x200] sm:$0xf]  ;;  %v1701_v63 = vor.u32 %v2109_v52, %v1700_v49 }
  0x42   :  { %1056 = vmatpush.bf16.msrb.mxu3 %v1933_v2  ;;  %v1828_v56 = vld [vmem:[#allocation5 + $0x310] sm:$0xf]  ;;  %v2141_v57 = vld [vmem:[#allocation5 + $0x314] sm:$0xf0]  ;;  %v2107_v62 = vld [vmem:[#allocation5 + $0x204] sm:$0xf0]  ;;  %v1765_v5 = vor.u32 %v2125_v54, %v1764_v53 }
  0x43   :  { %1015 = vmatpush.bf16.msrb.mxu0 %v1733_v9  ;;  %v1892_v59 = vld [vmem:[#allocation5 + $0x390] sm:$0xf]  ;;  %v2157_v60 = vld [vmem:[#allocation5 + $0x394] sm:$0xf0]  ;;  %v1756_v0 = vld [vmem:[#allocation5 + $0x280] sm:$0xf]  ;;  %v1829_v6 = vor.u32 %v2141_v57, %v1828_v56  ;;  %v1693_v19 = vor.u32 %v2107_v62, %v1692_v61 }
  0x44   :  { %1029 = vmatpush.bf16.msrb.mxu1 %v1797_v12  ;;  %v2123_v2 = vld [vmem:[#allocation5 + $0x284] sm:$0xf0]  ;;  %v1820_v3 = vld [vmem:[#allocation5 + $0x300] sm:$0xf]  ;;  %v2056_v9 = vld [vmem:[#allocation5 + $0x74] sm:$0xf]  ;;  %v1893_v11 = vor.u32 %v2157_v60, %v1892_v59 }
  0x45   :  { %1043 = vmatpush.bf16.msrb.mxu2 %v1861_v13  ;;  %v2139_v4 = vld [vmem:[#allocation5 + $0x304] sm:$0xf0]  ;;  %v1884_v7 = vld [vmem:[#allocation5 + $0x380] sm:$0xf]  ;;  %v1494_v12 = vld [vmem:[#allocation5 + $0x78] sm:$0xf0]  ;;  %v1757_v23 = vor.u32 %v2123_v2, %v1756_v0 }
  0x46   :  { %1057 = vmatpush.bf16.msrb.mxu3 %v1925_v18  ;;  %v2155_v8 = vld [vmem:[#allocation5 + $0x384] sm:$0xf0]  ;;  %v2072_v13 = vld [vmem:[#allocation5 + $0xf4] sm:$0xf]  ;;  %v1558_v14 = vld [vmem:[#allocation5 + $0xf8] sm:$0xf0]  ;;  %v1497_v29 = vor.u32 %v2056_v9, %v1494_v12 }
  0x47   :  { %1016 = vmatpush.bf16.msrb.mxu0 %v1725_v24  ;;  %v2088_v15 = vld [vmem:[#allocation5 + $0x174] sm:$0xf]  ;;  %v1622_v16 = vld [vmem:[#allocation5 + $0x178] sm:$0xf0]  ;;  %v292_v21 = vld [vmem:[#allocation2 + $0x20] sm:$0xff]  ;;  %v1821_v24 = vor.u32 %v2139_v4, %v1820_v3  ;;  %v1885_v28 = vor.u32 %v2155_v8, %v1884_v7  ;;  %v1561_v33 = vor.u32 %v2072_v13, %v1558_v14 }
  0x48   :  { %1030 = vmatpush.bf16.msrb.mxu1 %v1789_v25  ;;  %v2104_v18 = vld [vmem:[#allocation5 + $0x1f4] sm:$0xf]  ;;  %v1686_v20 = vld [vmem:[#allocation5 + $0x1f8] sm:$0xf0]  ;;  %v300_v22 = vld [vmem:[#allocation2 + $0x60] sm:$0xff]  ;;  %v1625_v34 = vor.u32 %v2088_v15, %v1622_v16 }
  0x49   :  { %1044 = vmatpush.bf16.msrb.mxu2 %v1853_v26  ;;  %v294_v25 = vld [vmem:[#allocation2 + $0x30] sm:$0xff]  ;;  %v293_v27 = vld [vmem:[#allocation2 + $0x28] sm:$0xff]  ;;  %v295_v31 = vld [vmem:[#allocation2 + $0x38] sm:$0xff]  ;;  %v2487_v39 = vpack.c.bf16 %v300_v22, %v292_v21 }
  0x4a   :  { %1058 = vmatpush.bf16.msrb.mxu3 %v1917_v30  ;;  %v302_v26 = vld [vmem:[#allocation2 + $0x70] sm:$0xff]  ;;  %v301_v30 = vld [vmem:[#allocation2 + $0x68] sm:$0xff]  ;;  %v303_v32 = vld [vmem:[#allocation2 + $0x78] sm:$0xff] }
  0x4b   :  { %1017 = vmatpush.bf16.msrb.mxu0 %v1717_v36  ;;  %v2054_v35 = vld [vmem:[#allocation5 + $0x64] sm:$0xf]  ;;  %v1486_v36 = vld [vmem:[#allocation5 + $0x68] sm:$0xf0]  ;;  %v2489_v43 = vpack.c.bf16 %v302_v26, %v294_v25  ;;  %v2491_v44 = vpack.c.bf16 %v301_v30, %v293_v27  ;;  %v2493_v47 = vpack.c.bf16 %v303_v32, %v295_v31  ;;  %v1478_v52 = vld [vmem:[#allocation5 + $0x58] sm:$0xf0] }
  0x4c   :  { %1031 = vmatpush.bf16.msrb.mxu1 %v1781_v37  ;;  %v2070_v37 = vld [vmem:[#allocation5 + $0xe4] sm:$0xf]  ;;  %v1550_v40 = vld [vmem:[#allocation5 + $0xe8] sm:$0xf0]  ;;  %v2068_v53 = vld [vmem:[#allocation5 + $0xd4] sm:$0xf] }
  0x4d   :  { %1045 = vmatpush.bf16.msrb.mxu2 %v1845_v38  ;;  %v1689_v38 = vor.u32 %v2104_v18, %v1686_v20  ;;  %v2086_v41 = vld [vmem:[#allocation5 + $0x164] sm:$0xf]  ;;  %v1678_v46 = vld [vmem:[#allocation5 + $0x1e8] sm:$0xf0]  ;;  %v1553_v49 = vor.u32 %v2070_v37, %v1550_v40  ;;  %v2084_v56 = vld [vmem:[#allocation5 + $0x154] sm:$0xf] }
  0x4e   :  { %1059 = vmatpush.bf16.msrb.mxu3 %v1909_v42  ;;  %v1614_v42 = vld [vmem:[#allocation5 + $0x168] sm:$0xf0]  ;;  %v2102_v45 = vld [vmem:[#allocation5 + $0x1e4] sm:$0xf]  ;;  %v1606_v57 = vld [vmem:[#allocation5 + $0x158] sm:$0xf0] }
  0x4f   :  { %1018 = vmatpush.bf16.msrb.mxu0 %v1709_v48  ;;  %v1489_v48 = vor.u32 %v2054_v35, %v1486_v36  ;;  %v1681_v54 = vor.u32 %v2102_v45, %v1678_v46  ;;  %v2100_v59 = vld [vmem:[#allocation5 + $0x1d4] sm:$0xf]  ;;  %v1670_v60 = vld [vmem:[#allocation5 + $0x1d8] sm:$0xf0]  ;;  %v2050_v0 = vld [vmem:[#allocation5 + $0x44] sm:$0xf] }
  0x50   :  { %1032 = vmatpush.bf16.msrb.mxu1 %v1773_v50  ;;  %v1617_v50 = vor.u32 %v2086_v41, %v1614_v42  ;;  %v1470_v2 = vld [vmem:[#allocation5 + $0x48] sm:$0xf0]  ;;  %v2066_v3 = vld [vmem:[#allocation5 + $0xc4] sm:$0xf]  ;;  %v1673_v4 = vor.u32 %v2100_v59, %v1670_v60  ;;  %v2048_v14 = vld [vmem:[#allocation5 + $0x34] sm:$0xf] }
  0x51   :  { %1046 = vmatpush.bf16.msrb.mxu2 %v1837_v51  ;;  %v2052_v51 = vld [vmem:[#allocation5 + $0x54] sm:$0xf]  ;;  %v1598_v7 = vld [vmem:[#allocation5 + $0x148] sm:$0xf0]  ;;  %v2098_v8 = vld [vmem:[#allocation5 + $0x1c4] sm:$0xf] }
  0x52   :  { %1060 = vmatpush.bf16.msrb.mxu3 %v1901_v55  ;;  %v1542_v55 = vld [vmem:[#allocation5 + $0xd8] sm:$0xf0]  ;;  %v1481_v61 = vor.u32 %v2052_v51, %v1478_v52  ;;  %v1662_v9 = vld [vmem:[#allocation5 + $0x1c8] sm:$0xf0]  ;;  %v2064_v16 = vld [vmem:[#allocation5 + $0xb4] sm:$0xf] }
  0x53   :  { %1019 = vmatpush.bf16.msrb.mxu0 %v1701_v63  ;;  %v1545_v62 = vor.u32 %v2068_v53, %v1542_v55  ;;  %v1609_v63 = vor.u32 %v2084_v56, %v1606_v57  ;;  %v1462_v15 = vld [vmem:[#allocation5 + $0x38] sm:$0xf0]  ;;  %v1665_v18 = vor.u32 %v2098_v8, %v1662_v9  ;;  %v2080_v20 = vld [vmem:[#allocation5 + $0x134] sm:$0xf]  ;;  %v2046_v27 = vld [vmem:[#allocation5 + $0x24] sm:$0xf] }
  0x54   :  { %1033 = vmatpush.bf16.msrb.mxu1 %v1765_v5  ;;  %v1534_v5 = vld [vmem:[#allocation5 + $0xc8] sm:$0xf0]  ;;  %v1590_v21 = vld [vmem:[#allocation5 + $0x138] sm:$0xf0]  ;;  %v2096_v22 = vld [vmem:[#allocation5 + $0x1b4] sm:$0xf] }
  0x55   :  { %1047 = vmatpush.bf16.msrb.mxu2 %v1829_v6  ;;  %v2082_v6 = vld [vmem:[#allocation5 + $0x144] sm:$0xf]  ;;  %v1537_v12 = vor.u32 %v2066_v3, %v1534_v5  ;;  %v1593_v26 = vor.u32 %v2080_v20, %v1590_v21  ;;  %v1518_v31 = vld [vmem:[#allocation5 + $0xa8] sm:$0xf0]  ;;  %v2044_v40 = vld [vmem:[#allocation5 + $0x14] sm:$0xf] }
  0x56   :  { %1061 = vmatpush.bf16.msrb.mxu3 %v1893_v11  ;;  %v1473_v11 = vor.u32 %v2050_v0, %v1470_v2  ;;  %v1601_v13 = vor.u32 %v2082_v6, %v1598_v7  ;;  %v2078_v32 = vld [vmem:[#allocation5 + $0x124] sm:$0xf]  ;;  %v1646_v35 = vld [vmem:[#allocation5 + $0x1a8] sm:$0xf0]  ;;  %v1446_v41 = vld [vmem:[#allocation5 + $0x18] sm:$0xf0] }
  0x57   :  { %1020 = vmatpush.bf16.msrb.mxu0 %v1693_v19  ;;  %v1526_v19 = vld [vmem:[#allocation5 + $0xb8] sm:$0xf0]  ;;  %v2060_v42 = vld [vmem:[#allocation5 + $0x94] sm:$0xf]  ;;  %v1449_v52 = vor.u32 %v2044_v40, %v1446_v41  ;;  %v2042_v53 = vld [vmem:[#allocation5 + $0x4] sm:$0xf] }
  0x58   :  { %1034 = vmatpush.bf16.msrb.mxu1 %v1757_v23  ;;  %v1654_v23 = vld [vmem:[#allocation5 + $0x1b8] sm:$0xf0]  ;;  %v1529_v25 = vor.u32 %v2064_v16, %v1526_v19  ;;  %v2058_v57 = vld [vmem:[#allocation5 + $0x84] sm:$0xf]  ;;  %v1502_v59 = vld [vmem:[#allocation5 + $0x88] sm:$0xf0] }
  0x59   :  { %1048 = vmatpush.bf16.msrb.mxu2 %v1821_v24  ;;  %v1465_v24 = vor.u32 %v2048_v14, %v1462_v15  ;;  %v1657_v30 = vor.u32 %v2096_v22, %v1654_v23  ;;  %v1510_v46 = vld [vmem:[#allocation5 + $0x98] sm:$0xf0]  ;;  %v2074_v60 = vld [vmem:[#allocation5 + $0x104] sm:$0xf]  ;;  %v1630_v0 = vld [vmem:[#allocation5 + $0x188] sm:$0xf0]  ;;  %v1505_v9 = vor.u32 %v2058_v57, %v1502_v59 }
  0x5a   :  { %1062 = vmatpush.bf16.msrb.mxu3 %v1885_v28  ;;  %1021 = vmatmul.bf16.vlgmr.msrb.gmra.mxu0 %v2487_v39  ;;  %v1454_v28 = vld [vmem:[#allocation5 + $0x28] sm:$0xf0]  ;;  %v1638_v51 = vld [vmem:[#allocation5 + $0x198] sm:$0xf0]  ;;  %v1513_v55 = vor.u32 %v2060_v42, %v1510_v46  ;;  %v2120_v2 = vld [vmem:[#allocation5 + $0x274] sm:$0xf] }
  0x5b   :  { %1069 = vmatpush.bf16.msra.mxu0 %v1497_v29  ;;  %1035 = vmatmul.bf16.vlgmr.msrb.gmra.mxu1 %v2491_v44  ;;  %v2062_v29 = vld [vmem:[#allocation5 + $0xa4] sm:$0xf]  ;;  %v1457_v36 = vor.u32 %v2046_v27, %v1454_v28  ;;  %v1750_v3 = vld [vmem:[#allocation5 + $0x278] sm:$0xf0]  ;;  %v2152_v7 = vld [vmem:[#allocation5 + $0x374] sm:$0xf] }
  0x5c   :  { %1083 = vmatpush.bf16.msra.mxu1 %v1561_v33  ;;  %1049 = vmatmul.bf16.vlgmr.msrb.gmra.mxu2 %v2489_v43  ;;  %v1582_v33 = vld [vmem:[#allocation5 + $0x128] sm:$0xf0]  ;;  %v1521_v37 = vor.u32 %v2062_v29, %v1518_v31  ;;  %v1814_v6 = vld [vmem:[#allocation5 + $0x2f8] sm:$0xf0]  ;;  %v1753_v15 = vor.u32 %v2120_v2, %v1750_v3  ;;  %v2118_v16 = vld [vmem:[#allocation5 + $0x264] sm:$0xf] }
  0x5d   :  { %1097 = vmatpush.bf16.msra.mxu2 %v1625_v34  ;;  %1063 = vmatmul.bf16.vlgmr.msrb.gmra.mxu3 %v2493_v47  ;;  %v2094_v34 = vld [vmem:[#allocation5 + $0x1a4] sm:$0xf]  ;;  %v1878_v8 = vld [vmem:[#allocation5 + $0x378] sm:$0xf0]  ;;  %v1806_v22 = vld [vmem:[#allocation5 + $0x2e8] sm:$0xf0] }
  0x5e   :  { %1111 = vmatpush.bf16.msra.mxu3 %v1689_v38  ;;  %v1585_v38 = vor.u32 %v2078_v32, %v1582_v33  ;;  %v1649_v45 = vor.u32 %v2094_v34, %v1646_v35  ;;  %v1881_v20 = vor.u32 %v2152_v7, %v1878_v8  ;;  %v2134_v21 = vld [vmem:[#allocation5 + $0x2e4] sm:$0xf]  ;;  %v1934_v27 = vld [vmem:[#allocation5 + $0x3e8] sm:$0xf0]  ;;  %v2116_v31 = vld [vmem:[#allocation5 + $0x254] sm:$0xf] }
  0x5f   :  { %1070 = vmatpush.bf16.msra.mxu0 %v1489_v48  ;;  %v2076_v48 = vld [vmem:[#allocation5 + $0x114] sm:$0xf]  ;;  %v1809_v29 = vor.u32 %v2134_v21, %v1806_v22  ;;  %v1734_v32 = vld [vmem:[#allocation5 + $0x258] sm:$0xf0]  ;;  %v2114_v46 = vld [vmem:[#allocation5 + $0x244] sm:$0xf] }
  0x60   :  { %1084 = vmatpush.bf16.msra.mxu1 %v1553_v49  ;;  %v1574_v49 = vld [vmem:[#allocation5 + $0x118] sm:$0xf0]  ;;  %v2132_v33 = vld [vmem:[#allocation5 + $0x2d4] sm:$0xf]  ;;  %v1737_v41 = vor.u32 %v2116_v31, %v1734_v32  ;;  %v2126_v7 = vld [vmem:[#allocation5 + $0x2a4] sm:$0xf] }
  0x61   :  { %1098 = vmatpush.bf16.msra.mxu2 %v1617_v50  ;;  %v2092_v50 = vld [vmem:[#allocation5 + $0x194] sm:$0xf]  ;;  %v1577_v56 = vor.u32 %v2076_v48, %v1574_v49  ;;  %v1798_v35 = vld [vmem:[#allocation5 + $0x2d8] sm:$0xf0]  ;;  %v1726_v48 = vld [vmem:[#allocation5 + $0x248] sm:$0xf0] }
  0x62   :  { %1112 = vmatpush.bf16.msra.mxu3 %v1681_v54  ;;  %v1438_v54 = vld [vmem:[#allocation5 + $0x8] sm:$0xf0]  ;;  %v1926_v40 = vld [vmem:[#allocation5 + $0x3d8] sm:$0xf0]  ;;  %v1801_v42 = vor.u32 %v2132_v33, %v1798_v35  ;;  %v2128_v57 = vld [vmem:[#allocation5 + $0x2b4] sm:$0xf] }
  0x63   :  { %1071 = vmatpush.bf16.msra.mxu0 %v1481_v61  ;;  %v1641_v61 = vor.u32 %v2092_v50, %v1638_v51  ;;  %v1441_v5 = vor.u32 %v2042_v53, %v1438_v54  ;;  %v1790_v50 = vld [vmem:[#allocation5 + $0x2c8] sm:$0xf0]  ;;  %v2146_v51 = vld [vmem:[#allocation5 + $0x344] sm:$0xf]  ;;  %v2124_v21 = vld [vmem:[#allocation5 + $0x294] sm:$0xf] }
  0x64   :  { %1085 = vmatpush.bf16.msra.mxu1 %v1545_v62  ;;  %v1566_v62 = vld [vmem:[#allocation5 + $0x108] sm:$0xf0]  ;;  %v2162_v53 = vld [vmem:[#allocation5 + $0x3c4] sm:$0xf] }
  0x65   :  { %1099 = vmatpush.bf16.msra.mxu2 %v1609_v63  ;;  %v2090_v63 = vld [vmem:[#allocation5 + $0x184] sm:$0xf]  ;;  %v1694_v32 = vld [vmem:[#allocation5 + $0x208] sm:$0xf0] }
  0x66   :  { %1113 = vmatpush.bf16.msra.mxu3 %v1673_v4  ;;  %v2136_v4 = vld [vmem:[#allocation5 + $0x2f4] sm:$0xf]  ;;  %v1633_v14 = vor.u32 %v2090_v63, %v1630_v0  ;;  %v1910_v0 = vld [vmem:[#allocation5 + $0x3b8] sm:$0xf0]  ;;  %v2106_v31 = vld [vmem:[#allocation5 + $0x204] sm:$0xf] }
  0x67   :  { %1072 = vmatpush.bf16.msra.mxu0 %v1473_v11  ;;  %v1569_v11 = vor.u32 %v2074_v60, %v1566_v62  ;;  %v1817_v19 = vor.u32 %v2136_v4, %v1814_v6  ;;  %v1782_v60 = vld [vmem:[#allocation5 + $0x2b8] sm:$0xf0]  ;;  %v2160_v63 = vld [vmem:[#allocation5 + $0x3b4] sm:$0xf]  ;;  %v1710_v6 = vld [vmem:[#allocation5 + $0x228] sm:$0xf0] }
  0x68   :  { %1086 = vmatpush.bf16.msra.mxu1 %v1537_v12  ;;  %v2168_v12 = vld [vmem:[#allocation5 + $0x3f4] sm:$0xf]  ;;  %v1846_v62 = vld [vmem:[#allocation5 + $0x338] sm:$0xf0]  ;;  %v1785_v3 = vor.u32 %v2128_v57, %v1782_v60  ;;  %v1913_v8 = vor.u32 %v2160_v63, %v1910_v0  ;;  %v2122_v33 = vld [vmem:[#allocation5 + $0x284] sm:$0xf] }
  0x69   :  { %1100 = vmatpush.bf16.msra.mxu2 %v1601_v13  ;;  %v1942_v13 = vld [vmem:[#allocation5 + $0x3f8] sm:$0xf0]  ;;  %v1758_v35 = vld [vmem:[#allocation5 + $0x288] sm:$0xf0] }
  0x6a   :  { %1114 = vmatpush.bf16.msra.mxu3 %v1665_v18  ;;  %v1742_v18 = vld [vmem:[#allocation5 + $0x268] sm:$0xf0]  ;;  %v1945_v23 = vor.u32 %v2168_v12, %v1942_v13  ;;  %v2158_v13 = vld [vmem:[#allocation5 + $0x3a4] sm:$0xf] }
  0x6b   :  { %1073 = vmatpush.bf16.msra.mxu0 %v1465_v24  ;;  %v2150_v24 = vld [vmem:[#allocation5 + $0x364] sm:$0xf]  ;;  %v1745_v28 = vor.u32 %v2118_v16, %v1742_v18  ;;  %v1838_v12 = vld [vmem:[#allocation5 + $0x328] sm:$0xf0] }
  0x6c   :  { %1087 = vmatpush.bf16.msra.mxu1 %v1529_v25  ;;  %v1870_v25 = vld [vmem:[#allocation5 + $0x368] sm:$0xf0] }
  0x6d   :  { %1101 = vmatpush.bf16.msra.mxu2 %v1593_v26  ;;  %v2166_v26 = vld [vmem:[#allocation5 + $0x3e4] sm:$0xf] }
  0x6e   :  { %1115 = vmatpush.bf16.msra.mxu3 %v1657_v30  ;;  %v1873_v30 = vor.u32 %v2150_v24, %v1870_v25  ;;  %v1937_v34 = vor.u32 %v2166_v26, %v1934_v27  ;;  %v2140_v24 = vld [vmem:[#allocation5 + $0x314] sm:$0xf]  ;;  %v1830_v25 = vld [vmem:[#allocation5 + $0x318] sm:$0xf0] }
  0x6f   :  { %1074 = vmatpush.bf16.msra.mxu0 %v1457_v36  ;;  %v2148_v36 = vld [vmem:[#allocation5 + $0x354] sm:$0xf]  ;;  %v1894_v27 = vld [vmem:[#allocation5 + $0x398] sm:$0xf0] }
  0x70   :  { %1088 = vmatpush.bf16.msra.mxu1 %v1521_v37  ;;  %v1862_v37 = vld [vmem:[#allocation5 + $0x358] sm:$0xf0]  ;;  %v2156_v26 = vld [vmem:[#allocation5 + $0x394] sm:$0xf] }
  0x71   :  { %1102 = vmatpush.bf16.msra.mxu2 %v1585_v38  ;;  %v2164_v38 = vld [vmem:[#allocation5 + $0x3d4] sm:$0xf] }
  0x72   :  { %1116 = vmatpush.bf16.msra.mxu3 %v1649_v45  ;;  %v1865_v45 = vor.u32 %v2148_v36, %v1862_v37  ;;  %v1929_v49 = vor.u32 %v2164_v38, %v1926_v40  ;;  %v2138_v36 = vld [vmem:[#allocation5 + $0x304] sm:$0xf]  ;;  %v1822_v37 = vld [vmem:[#allocation5 + $0x308] sm:$0xf0] }
  0x73   :  { %1075 = vmatpush.bf16.msra.mxu0 %v1449_v52  ;;  %v1854_v52 = vld [vmem:[#allocation5 + $0x348] sm:$0xf0]  ;;  %v2154_v38 = vld [vmem:[#allocation5 + $0x384] sm:$0xf] }
  0x74   :  { %1089 = vmatpush.bf16.msra.mxu1 %v1513_v55  ;;  %v2112_v55 = vld [vmem:[#allocation5 + $0x234] sm:$0xf]  ;;  %v1886_v40 = vld [vmem:[#allocation5 + $0x388] sm:$0xf0] }
  0x75   :  { %1103 = vmatpush.bf16.msra.mxu2 %v1577_v56  ;;  %v1718_v56 = vld [vmem:[#allocation5 + $0x238] sm:$0xf0] }
  0x76   :  { %1117 = vmatpush.bf16.msra.mxu3 %v1641_v61  ;;  %v2144_v61 = vld [vmem:[#allocation5 + $0x334] sm:$0xf]  ;;  %v1721_v2 = vor.u32 %v2112_v55, %v1718_v56 }
  0x77   :  { %1076 = vmatpush.bf16.msra.mxu0 %v1441_v5  ;;  %v1849_v4 = vor.u32 %v2144_v61, %v1846_v62  ;;  %v2110_v5 = vld [vmem:[#allocation5 + $0x224] sm:$0xf] }
  0x78   :  { %1090 = vmatpush.bf16.msra.mxu1 %v1505_v9  ;;  %v1774_v9 = vld [vmem:[#allocation5 + $0x2a8] sm:$0xf0] }
  0x79   :  { %1104 = vmatpush.bf16.msra.mxu2 %v1569_v11  ;;  %v2142_v11 = vld [vmem:[#allocation5 + $0x324] sm:$0xf]  ;;  %v1777_v16 = vor.u32 %v2126_v7, %v1774_v9 }
  0x7a   :  { %1118 = vmatpush.bf16.msra.mxu3 %v1633_v14  ;;  %1077 = vmatmul.bf16.vlgmr.msra.gmra.mxu0 %v2475_v58  ;;  %v1918_v58 = vld [vmem:[#allocation5 + $0x3c8] sm:$0xf0]  ;;  %v1841_v18 = vor.u32 %v2142_v11, %v1838_v12 }
  0x7b   :  { %1125 = vmatpush.bf16.msrb.mxu0 %v1753_v15  ;;  %1091 = vmatmul.bf16.vlgmr.msra.gmra.mxu1 %v2481_v10  ;;  %v1857_v10 = vor.u32 %v2146_v51, %v1854_v52  ;;  %v1921_v59 = vor.u32 %v2162_v53, %v1918_v58  ;;  %v1902_v14 = vld [vmem:[#allocation5 + $0x3a8] sm:$0xf0]  ;;  %v1713_v15 = vor.u32 %v2110_v5, %v1710_v6  ;;  %v2173_v51 = vld [vmem:[#allocation8 + $0x18] sm:$0xff]  ;;  %v2172_v53 = vld [vmem:[#allocation8 + $0x10] sm:$0xff] }
  0x7c   :  { %1139 = vmatpush.bf16.msrb.mxu1 %v1817_v19  ;;  %1105 = vmatmul.bf16.vlgmr.msra.gmra.mxu2 %v2477_v1  ;;  %v2130_v1 = vld [vmem:[#allocation5 + $0x2c4] sm:$0xf]  ;;  %v2108_v19 = vld [vmem:[#allocation5 + $0x214] sm:$0xf]  ;;  %v1905_v22 = vor.u32 %v2158_v13, %v1902_v14  ;;  %v2507_v58 = vld [vmem:[#allocation7] sm:$0x3] }
  0x7d   :  { %1153 = vmatpush.bf16.msrb.mxu2 %v1881_v20  ;;  %1119 = vmatmul.bf16.vlgmr.msra.gmra.mxu3 %v2483_v17  ;;  %v1729_v17 = vor.u32 %v2114_v46, %v1726_v48  ;;  %v1793_v54 = vor.u32 %v2130_v1, %v1790_v50  ;;  %v1702_v20 = vld [vmem:[#allocation5 + $0x218] sm:$0xf0]  ;;  %v1889_v46 = vor.u32 %v2154_v38, %v1886_v40  ;;  %v2176_v1 = vld [vmem:[#allocation8 + $0x30] sm:$0xff]  ;;  %v2174_v50 = vld [vmem:[#allocation8 + $0x20] sm:$0xff] }
  0x7e   :  { %1167 = vmatpush.bf16.msrb.mxu3 %v1945_v23  ;;  %v1766_v23 = vld [vmem:[#allocation5 + $0x298] sm:$0xf0] }
  0x7f   :  { %1126 = vmatpush.bf16.msrb.mxu0 %v1745_v28  ;;  %v1705_v28 = vor.u32 %v2108_v19, %v1702_v20  ;;  %v2177_v48 = vld [vmem:[#allocation8 + $0x38] sm:$0xff] }
  0x80   :  { %1140 = vmatpush.bf16.msrb.mxu1 %v1809_v29  ;;  %v1769_v29 = vor.u32 %v2124_v21, %v1766_v23 }
  0x81   :  { %1154 = vmatpush.bf16.msrb.mxu2 %v1873_v30  ;;  %v1833_v30 = vor.u32 %v2140_v24, %v1830_v25 }
  0x82   :  { %1168 = vmatpush.bf16.msrb.mxu3 %v1937_v34  ;;  %v1897_v34 = vor.u32 %v2156_v26, %v1894_v27  ;;  %v2183_v27 = vld [vmem:[#allocation8 + $0x68] sm:$0xff] }
  0x83   :  { %1127 = vmatpush.bf16.msrb.mxu0 %v1737_v41  ;;  %v1697_v41 = vor.u32 %v2106_v31, %v1694_v32  ;;  %v2179_v32 = vld [vmem:[#allocation8 + $0x48] sm:$0xff] }
  0x84   :  { %1141 = vmatpush.bf16.msrb.mxu1 %v1801_v42  ;;  %v1761_v42 = vor.u32 %v2122_v33, %v1758_v35  ;;  %v2178_v35 = vld [vmem:[#allocation8 + $0x40] sm:$0xff] }
  0x85   :  { %1155 = vmatpush.bf16.msrb.mxu2 %v1865_v45  ;;  %v1825_v45 = vor.u32 %v2138_v36, %v1822_v37 }
  0x86   :  { %1169 = vmatpush.bf16.msrb.mxu3 %v1929_v49  ;;  %v2175_v49 = vld [vmem:[#allocation8 + $0x28] sm:$0xff] }
  0x87   :  { %1128 = vmatpush.bf16.msrb.mxu0 %v1729_v17 }
  0x88   :  { %1142 = vmatpush.bf16.msrb.mxu1 %v1793_v54 }
  0x89   :  { %1156 = vmatpush.bf16.msrb.mxu2 %v1857_v10  ;;  %v2170_v10 = vld [vmem:[#allocation8] sm:$0xff] }
  0x8a   :  { %1170 = vmatpush.bf16.msrb.mxu3 %v1921_v59 }
  0x8b   :  { %1129 = vmatpush.bf16.msrb.mxu0 %v1721_v2 }
  0x8c   :  { %1143 = vmatpush.bf16.msrb.mxu1 %v1785_v3 }
  0x8d   :  { %1157 = vmatpush.bf16.msrb.mxu2 %v1849_v4 }
  0x8e   :  { %1171 = vmatpush.bf16.msrb.mxu3 %v1913_v8 }
  0x8f   :  { %1130 = vmatpush.bf16.msrb.mxu0 %v1713_v15 }
  0x90   :  { %1144 = vmatpush.bf16.msrb.mxu1 %v1777_v16 }
  0x91   :  { %1158 = vmatpush.bf16.msrb.mxu2 %v1841_v18  ;;  %v2185_v18 = vld [vmem:[#allocation8 + $0x78] sm:$0xff] }
  0x92   :  { %1172 = vmatpush.bf16.msrb.mxu3 %v1905_v22  ;;  %v2184_v22 = vld [vmem:[#allocation8 + $0x70] sm:$0xff] }
  0x93   :  { %1131 = vmatpush.bf16.msrb.mxu0 %v1705_v28  ;;  %v2182_v28 = vld [vmem:[#allocation8 + $0x60] sm:$0xff] }
  0x94   :  { %1145 = vmatpush.bf16.msrb.mxu1 %v1769_v29  ;;  %v2181_v29 = vld [vmem:[#allocation8 + $0x58] sm:$0xff] }
  0x95   :  { %1159 = vmatpush.bf16.msrb.mxu2 %v1833_v30  ;;  %v2180_v30 = vld [vmem:[#allocation8 + $0x50] sm:$0xff] }
  0x96   :  { %1173 = vmatpush.bf16.msrb.mxu3 %v1897_v34  ;;  %v314_v34 = vperm.slane %v2507_v58, 1 }
  0x97   :  { %1132 = vmatpush.bf16.msrb.mxu0 %v1697_v41 }
  0x98   :  { %1146 = vmatpush.bf16.msrb.mxu1 %v1761_v42 }
  0x99   :  { %1160 = vmatpush.bf16.msrb.mxu2 %v1825_v45 }
  0x9a   :  { %1174 = vmatpush.bf16.msrb.mxu3 %v1889_v46  ;;  %1133 = vmatmul.bf16.vlgmr.msrb.gmra.mxu0 %v2487_v39 }
  0x9b   :  { %1147 = vmatmul.bf16.vlgmr.msrb.gmra.mxu1 %v2491_v44  ;;  %1286 = vmatpush.bf16.msra.mxu0 %v2177_v48  ;;  %v2171_v44 = vld [vmem:[#allocation8 + $0x8] sm:$0xff] }
  0x9c   :  { %1161 = vmatmul.bf16.vlgmr.msrb.gmra.mxu2 %v2489_v43  ;;  %v313_v43 = vperm.slane %v2507_v58, 0  ;;  %1300 = vmatpush.bf16.msra.mxu1 %v2185_v18 }
  0x9d   :  { %1175 = vmatmul.bf16.vlgmr.msrb.gmra.mxu3 %v2493_v47 }
  0x9f   :  { %1287 = vmatpush.bf16.msra.mxu0 %v2176_v1 }
  0xa0   :  { %1301 = vmatpush.bf16.msra.mxu1 %v2184_v22 }
  0xa3   :  { %1288 = vmatpush.bf16.msra.mxu0 %v2175_v49 }
  0xa4   :  { %1302 = vmatpush.bf16.msra.mxu1 %v2183_v27 }
  0xa7   :  { %1289 = vmatpush.bf16.msra.mxu0 %v2174_v50 }
  0xa8   :  { %1303 = vmatpush.bf16.msra.mxu1 %v2182_v28 }
  0xab   :  { %1290 = vmatpush.bf16.msra.mxu0 %v2173_v51 }
  0xac   :  { %1304 = vmatpush.bf16.msra.mxu1 %v2181_v29 }
  0xaf   :  { %1291 = vmatpush.bf16.msra.mxu0 %v2172_v53 }
  0xb0   :  { %1305 = vmatpush.bf16.msra.mxu1 %v2180_v30 }
  0xb3   :  { %1292 = vmatpush.bf16.msra.mxu0 %v2171_v44 }
  0xb4   :  { %1306 = vmatpush.bf16.msra.mxu1 %v2179_v32 }
  0xb7   :  { %v966_v52 = vpop.f32.mrf.mxu0  ;;  %1293 = vmatpush.bf16.msra.mxu0 %v2170_v10 }
  0xb8   :  { %v980_v39 = vpop.f32.mrf.mxu1  ;;  %v967_v17 = vadd.f32 %v966_v52, %v313_v43  ;;  %1307 = vmatpush.bf16.msra.mxu1 %v2178_v35 }
  0xba   :  { %v981_v57 = vadd.f32 %v980_v39, %v967_v17 }
  0xbf   :  { %v994_v47 = vpop.f32.mrf.mxu2  ;;  %v968_v55 = vpop.f32.mrf.mxu0 }
  0xc0   :  { %v1008_v54 = vpop.f32.mrf.mxu3  ;;  %v982_v56 = vpop.f32.mrf.mxu1  ;;  %v969_v59 = vadd.f32 %v968_v55, %v313_v43  ;;  %v995_v60 = vadd.f32 %v994_v47, %v981_v57 }
  0xc2   :  { %v983_v62 = vadd.f32 %v982_v56, %v969_v59  ;;  %v1009_v0 = vadd.f32 %v1008_v54, %v995_v60 }
  0xc7   :  { %v996_v61 = vpop.f32.mrf.mxu2 }
  0xc8   :  { %v1010_v63 = vpop.f32.mrf.mxu3  ;;  %v997_v4 = vadd.f32 %v996_v61, %v983_v62 }
  0xca   :  { %v1011_v6 = vadd.f32 %v1010_v63, %v997_v4  ;;  %v2192_v4 = vld [vmem:[#allocation10 + $0x30] sm:$0xff] }
  0xd7   :  { %v1022_v2 = vpop.f32.mrf.mxu0 }
  0xd8   :  { %v1036_v3 = vpop.f32.mrf.mxu1  ;;  %v1023_v5 = vadd.f32 %v1022_v2, %v1009_v0 }
  0xda   :  { %v1037_v8 = vadd.f32 %v1036_v3, %v1023_v5  ;;  %v2193_v3 = vld [vmem:[#allocation10 + $0x38] sm:$0xff]  ;;  %v2191_v5 = vld [vmem:[#allocation10 + $0x28] sm:$0xff] }
  0xdb   :  { %1377 = vmatpush.bf16.msra.mxu2 %v2193_v3 }
  0xdf   :  { %v1050_v7 = vpop.f32.mrf.mxu2  ;;  %v1024_v9 = vpop.f32.mrf.mxu0  ;;  %1378 = vmatpush.bf16.msra.mxu2 %v2192_v4 }
  0xe0   :  { %v1064_v11 = vpop.f32.mrf.mxu3  ;;  %v1025_v12 = vadd.f32 %v1024_v9, %v1011_v6  ;;  %v1038_v13 = vpop.f32.mrf.mxu1  ;;  %v1051_v14 = vadd.f32 %v1050_v7, %v1037_v8  ;;  %v2190_v6 = vld [vmem:[#allocation10 + $0x20] sm:$0xff]  ;;  %v2189_v7 = vld [vmem:[#allocation10 + $0x18] sm:$0xff]  ;;  %v2188_v8 = vld [vmem:[#allocation10 + $0x10] sm:$0xff] }
  0xe1   :  { %v2187_v9 = vld [vmem:[#allocation10 + $0x8] sm:$0xff] }
  0xe2   :  { %v1039_v15 = vadd.f32 %v1038_v13, %v1025_v12  ;;  %v1065_v19 = vadd.f32 %v1064_v11, %v1051_v14  ;;  %v2186_v11 = vld [vmem:[#allocation10] sm:$0xff]  ;;  %v2216_v13 = vld [vmem:[%s2533_s4] ss:$0 sm:$0xff] }
  0xe3   :  { %1379 = vmatpush.bf16.msra.mxu2 %v2191_v5 }
  0xe4   :  { %v1181_v24 = vmax.f32 %v1065_v19, 0.0 }
  0xe7   :  { %v1052_v16 = vpop.f32.mrf.mxu2  ;;  %1380 = vmatpush.bf16.msra.mxu2 %v2190_v6 }
  0xe8   :  { %v1053_v20 = vadd.f32 %v1052_v16, %v1039_v15  ;;  %v1066_v21 = vpop.f32.mrf.mxu3 }
  0xea   :  { %v1067_v23 = vadd.f32 %v1066_v21, %v1053_v20 }
  0xeb   :  { %1381 = vmatpush.bf16.msra.mxu2 %v2189_v7 }
  0xec   :  { %v1183_v25 = vmax.f32 %v1067_v23, 0.0 }
  0xee   :  { %v1185_v26 = vpack.c.bf16 %v1183_v25, %v1181_v24 }
  0xef   :  { %1382 = vmatpush.bf16.msra.mxu2 %v2188_v8 }
  0xf0   :  { %1294 = vmatmul.bf16.vlgmr.msra.gmra.mxu0 %v1185_v26 }
  0xf3   :  { %1383 = vmatpush.bf16.msra.mxu2 %v2187_v9 }
  0xf7   :  { %v1078_v31 = vpop.f32.mrf.mxu0  ;;  %1384 = vmatpush.bf16.msra.mxu2 %v2186_v11 }
  0xf8   :  { %v1092_v33 = vpop.f32.mrf.mxu1  ;;  %v1079_v38 = vadd.f32 %v1078_v31, %v314_v34  ;;  %v2217_v31 = vld [vmem:[%s2535_s6] ss:$0 sm:$0xff] }
  0xfa   :  { %v1093_v42 = vadd.f32 %v1092_v33, %v1079_v38 }
  0xff   :  { %v1106_v36 = vpop.f32.mrf.mxu2  ;;  %v1080_v40 = vpop.f32.mrf.mxu0 }
 0x100   :  { %v1120_v37 = vpop.f32.mrf.mxu3  ;;  %v1094_v41 = vpop.f32.mrf.mxu1  ;;  %v1081_v45 = vadd.f32 %v1080_v40, %v314_v34  ;;  %v1107_v48 = vadd.f32 %v1106_v36, %v1093_v42 }
 0x102   :  { %v1095_v1 = vadd.f32 %v1094_v41, %v1081_v45  ;;  %v1121_v52 = vadd.f32 %v1120_v37, %v1107_v48 }
 0x107   :  { %v1108_v46 = vpop.f32.mrf.mxu2 }
 0x108   :  { %v1122_v49 = vpop.f32.mrf.mxu3  ;;  %v1109_v53 = vadd.f32 %v1108_v46, %v1095_v1 }
 0x10a   :  { %v1123_v58 = vadd.f32 %v1122_v49, %v1109_v53 }
 0x117   :  { %v1134_v50 = vpop.f32.mrf.mxu0 }
 0x118   :  { %v1148_v51 = vpop.f32.mrf.mxu1  ;;  %v1135_v39 = vadd.f32 %v1134_v50, %v1121_v52 }
 0x11a   :  { %v1149_v17 = vadd.f32 %v1148_v51, %v1135_v39 }
 0x11f   :  { %v1162_v43 = vpop.f32.mrf.mxu2  ;;  %v1136_v47 = vpop.f32.mrf.mxu0 }
 0x120   :  { %v1176_v44 = vpop.f32.mrf.mxu3  ;;  %v1137_v54 = vadd.f32 %v1136_v47, %v1123_v58  ;;  %v1163_v10 = vadd.f32 %v1162_v43, %v1149_v17  ;;  %v1150_v55 = vpop.f32.mrf.mxu1 }
 0x122   :  { %v1151_v56 = vadd.f32 %v1150_v55, %v1137_v54  ;;  %v1177_v59 = vadd.f32 %v1176_v44, %v1163_v10 }
 0x124   :  { %v1182_v63 = vmax.f32 %v1177_v59, 0.0 }
 0x127   :  { %v1164_v57 = vpop.f32.mrf.mxu2 }
 0x128   :  { %v1165_v60 = vadd.f32 %v1164_v57, %v1151_v56  ;;  %v1178_v61 = vpop.f32.mrf.mxu3 }
 0x12a   :  { %v1179_v62 = vadd.f32 %v1178_v61, %v1165_v60 }
 0x12c   :  { %v1184_v0 = vmax.f32 %v1179_v62, 0.0 }
 0x12e   :  { %v1186_v2 = vpack.c.bf16 %v1184_v0, %v1182_v63 }
 0x130   :  { %1308 = vmatmul.bf16.vlgmr.msra.gmra.mxu1 %v1186_v2 }
 0x16d   :  { %v1295_v12 = vpop.f32.mrf.mxu0 }
 0x16e   :  { %v1296_v15 = vadd.f32 %v2216_v13, %v1295_v12 }
 0x175   :  { %v1297_v18 = vpop.f32.mrf.mxu0 }
 0x176   :  { %v1298_v19 = vadd.f32 %v2216_v13, %v1297_v18 }
 0x1ad   :  { %v1309_v14 = vpop.f32.mrf.mxu1 }
 0x1ae   :  { %v1310_v16 = vadd.f32 %v1309_v14, %v1296_v15 }
 0x1b0   :  { %v1314_v20 = vmax.f32 %v1310_v16, 0.0 }
 0x1b2   :  { %v1316_v23 = vpack.c.bf16 %v1314_v20, %v1314_v20 }
 0x1b4   :  { %v1325_v27 = vunpack.c.l.b16 %v1316_v23 }
 0x1b5   :  { %v1311_v21 = vpop.f32.mrf.mxu1 }
 0x1b6   :  { %v1312_v22 = vadd.f32 %v1311_v21, %v1298_v19 }
 0x1b8   :  { %v1315_v24 = vmax.f32 %v1312_v22, 0.0 }
 0x1ba   :  { %v1317_v25 = vpack.c.bf16 %v1315_v24, %v1315_v24  ;;  %v2197_v26 = vpack.c.bf16 %v1315_v24, %v1314_v20 }
 0x1bc   :  { %v1326_v28 = vunpack.c.l.b16 %v1317_v25  ;;  %2198 = vst [vmem:[#allocation12] sm:$0xff] %v2197_v26  }
 0x1bd   :  { %1420 = dma.vmem_to_hbm [thread:$0]  %s1413_s11, 128, %s1415_s13, [#allocation13], %s2400_s17, %s2400_s17, %s2401_s18  }
 0x1be   :  { %v1327_v29 = vpack.c.b16 %v1326_v28, %v1325_v27 }
 0x1c0   :  { %1385 = vmatmul.bf16.vlgmr.msra.gmra.mxu2 %v1327_v29 }
 0x243   :  { %v1386_v30 = vpop.f32.mrf.mxu2 }
 0x244   :  { %v1387_v33 = vadd.f32 %v2217_v31, %v1386_v30 }
 0x24b   :  { %v1388_v32 = vpop.f32.mrf.mxu2 }
 0x24c   :  { %v1389_v34 = vadd.f32 %v2217_v31, %v1388_v32 }
 0x24e   :  { %v2202_v35 = vpack.c.bf16 %v1389_v34, %v1387_v33 }
 0x250   :  { %2203 = vst [vmem:[#allocation11] sm:$0xff] %v2202_v35  }
 0x251   :  { %1407 = dma.vmem_to_hbm [thread:$0]  %s1400_s1, 128, %s1402_s21, [#allocation4], %s2400_s17, %s2400_s17, %s2401_s18  }
 0x252   :  { %2392 = dma.done.wait [#allocation4], 128  }
 0x253   :  { %2393 = vsyncadd [#allocation4], 4294967168 }
 0x254   :  { %2394 = dma.done.wait [#allocation13], 128  }
 0x255   :  { %2395 = vsyncadd [#allocation13], 4294967168 }
 0x256   :  { %1429 = vsyncpa [#allocation3], 1 }
 0x257   :  { %1430 = vsyncpa [#allocation6], 1 }
 0x258   :  { %1431 = vsyncpa [#allocation9], 1 }
 0x259   :  { %1432 = vsyncpa [#allocation4], 1 }
 0x25a   :  { %1433 = vsyncpa [#allocation13], 1 }

</bundles_post_ra>
